<compile_context>
chip_gen: v5e
topology: v5e:2x2
jax: 0.10.0
libtpu: 0.0.40
codegen_flags: <defaults>
</compile_context>

<pallas_src>
import jax
import jax.numpy as jnp
from jax.experimental import pallas as pl
from jax.experimental.pallas import tpu as pltpu

LN_EPS = 1e-5  # torch.nn.LayerNorm default


def _fusion_kernel(clip_ref,   # VMEM (tm, Dc)  activation dtype
                   dino_ref,   # VMEM (tm, Dd)  activation dtype
                   w_ref,      # VMEM (Dd, Dc)  pre-transposed W.T, activation dtype
                   par_ref,    # VMEM (8,  Dc)  f32: [bias, a*gamma, (1-a)*gamma, beta, 0...]
                   out_ref):   # VMEM (tm, Dc)
    bias = par_ref[0:1, :]
    g_a = par_ref[1:2, :]
    g_d = par_ref[2:3, :]
    beta = par_ref[3:4, :]

    # DINO token projection on the MXU: operands stay in their native dtype
    # (bf16 x bf16 when the model runs bf16), accumulate in f32.
    proj = jnp.dot(dino_ref[...], w_ref[...],
                   preferred_element_type=jnp.float32) + bias

    def normalize(x):
        # LayerNorm without the affine part; math in f32 (v5e-safe).
        mu = jnp.mean(x, axis=-1, keepdims=True)
        xc = x - mu
        var = jnp.mean(xc * xc, axis=-1, keepdims=True)
        return xc * jax.lax.rsqrt(var + LN_EPS)

    clip_hat = normalize(clip_ref[...].astype(jnp.float32))
    dino_hat = normalize(proj)

    # alpha already folded into g_a / g_d on the host.
    out_ref[...] = (clip_hat * g_a + dino_hat * g_d + beta).astype(out_ref.dtype)


def _round_up(x, m):
    return ((x + m - 1) // m) * m


def linear_projection_fusion(clip_feats, dino_feats, params, *, tm=512):
    """clip_feats: [B, Sc, clip_dim]; dino_feats: [B, Sd, dino_dim] (Sd >= Sc)."""
    B, Sc, Dc = clip_feats.shape
    _, Sd, Dd = dino_feats.shape
    assert Sd >= Sc, "DINO sequence must cover the CLIP tokens"

    # ----- host-side parameter prep (tiny, one-time) --------------------
    # Weight pre-transposed to (Dd, Dc); cast to the activation dtype so the
    # MXU sees the native low-precision path when the model runs bf16.
    w_t = params["dino_proj_wT"].astype(dino_feats.dtype)

    alpha = jnp.asarray(params["alpha"], jnp.float32)
    gamma = params["ln_weight"].astype(jnp.float32)
    beta = params["ln_bias"].astype(jnp.float32)
    bias = params["dino_proj_b"].astype(jnp.float32)

    par = jnp.zeros((8, Dc), jnp.float32)
    par = (par.at[0].set(bias)
              .at[1].set(alpha * gamma)
              .at[2].set((1.0 - alpha) * gamma)
              .at[3].set(beta))

    # ----- generation-aware sizing ---------------------------------------
    try:
        vmem_cap = int(pltpu.get_tpu_info().vmem_capacity_bytes)
    except Exception:
        vmem_cap = 128 * 1024 * 1024          # conservative default (v5e/v6e)
    two_tc = vmem_cap <= 64 * 1024 * 1024     # v7x-class: 64 MiB VMEM / TC, 2 TCs
    budget = min(vmem_cap // 2, 64 * 1024 * 1024)

    cb = jnp.dtype(clip_feats.dtype).itemsize
    db = jnp.dtype(dino_feats.dtype).itemsize
    wb = jnp.dtype(w_t.dtype).itemsize
    ob = cb

    # Sublane alignment: 8 rows for 4-byte dtypes, 16 for bf16/f16.
    sub = 8 if min(cb, db) >= 4 else 16

    const_bytes = 2 * (Dd * Dc * wb + 8 * Dc * 4)         # resident weight + packed params
    per_row = 2 * (Dc * cb + Dd * db + Dc * ob)            # double-buffered in/out tiles
    per_row_scr = per_row + 3 * Dc * 4                     # f32 temporaries in the body

    tm_cap = max(sub, ((budget - const_bytes) // per_row_scr) // sub * sub)
    tm = min(tm, tm_cap, _round_up(Sc, sub))
    tm = max(tm, sub)

    # Only split for megacore on 2-TC chips, and split evenly so neither core idles.
    if two_tc and Sc > sub and B * pl.cdiv(Sc, tm) < 2:
        tm = max(sub, _round_up(-(-Sc // 2), sub))

    grid = (B, pl.cdiv(Sc, tm))   # ragged last seq block handled by Pallas masking

    est_bytes = const_bytes + tm * per_row_scr
    vmem_limit = int(min(max(2 * est_bytes, 32 * 1024 * 1024), vmem_cap * 7 // 10))

    out = pl.pallas_call(
        _fusion_kernel,
        out_shape=jax.ShapeDtypeStruct((B, Sc, Dc), clip_feats.dtype),
        grid_spec=pltpu.PrefetchScalarGridSpec(
            num_scalar_prefetch=0,
            grid=grid,
            in_specs=[
                # CLIP tokens for this (batch, seq-tile).
                pl.BlockSpec((None, tm, Dc), lambda b, i: (b, i, 0)),
                # DINO tokens read straight from the full [B, Sd, Dd] array:
                # no host-side slice/reshape copy, only the first Sc tokens
                # are ever DMA'd.
                pl.BlockSpec((None, tm, Dd), lambda b, i: (b, i, 0)),
                # Resident pre-transposed weight (constant block index).
                pl.BlockSpec((Dd, Dc), lambda b, i: (0, 0)),
                # Packed bias / alpha*gamma / (1-alpha)*gamma / beta.
                pl.BlockSpec((8, Dc), lambda b, i: (0, 0)),
            ],
            out_specs=pl.BlockSpec((None, tm, Dc), lambda b, i: (b, i, 0)),
        ),
        compiler_params=pltpu.CompilerParams(
            dimension_semantics=("parallel", "parallel"),
            vmem_limit_bytes=vmem_limit),
    )(clip_feats, dino_feats, w_t, par)

    return out


def reference(clip_feats, dino_feats, params):
    Sc = clip_feats.shape[1]
    proj = (dino_feats[:, :Sc, :].astype(jnp.float32)
            @ params["dino_proj_wT"].astype(jnp.float32)
            + params["dino_proj_b"])

    def ln(x):
        x = x.astype(jnp.float32)
        mu = jnp.mean(x, axis=-1, keepdims=True)
        var = jnp.mean((x - mu) ** 2, axis=-1, keepdims=True)
        return (x - mu) / jnp.sqrt(var + LN_EPS) * params["ln_weight"] + params["ln_bias"]

    a = params["alpha"]
    return a * ln(clip_feats) + (1.0 - a) * ln(proj)


def init_params(key, clip_dim, dino_dim):
    kw, kb = jax.random.split(key)
    # Weight ~ N(0, 0.02) as in the module's reset(); stored already transposed
    # to (dino_dim, clip_dim) so no per-call XLA transpose is needed.  Kept in
    # f32 here; the wrapper casts it to the activation dtype once per call.
    w = 0.02 * jax.random.normal(kw, (clip_dim, dino_dim), jnp.float32)
    b = 0.02 * jax.random.normal(kb, (clip_dim,), jnp.float32)  # non-zero so bias path is tested
    return {
        "dino_proj_wT": w.T,                                # (dino_dim, clip_dim)
        "dino_proj_b": b,                                   # (clip_dim,)
        "ln_weight": jnp.ones((clip_dim,), jnp.float32),
        "ln_bias": jnp.zeros((clip_dim,), jnp.float32),
        # alpha != 1 so the DINO branch actually contributes in the test.
        "alpha": jnp.array(0.7, jnp.float32),
    }


if __name__ == "__main__":
    # Small stand-in shapes: (clip_dim=128, dino_dim=256), 16 CLIP tokens / 24 DINO tokens.
    B, S_CLIP, S_DINO = 2, 16, 24
    CLIP_DIM, DINO_DIM = 128, 256

    key = jax.random.PRNGKey(0)
    k1, k2, k3 = jax.random.split(key, 3)

    clip_feats = jax.random.normal(k1, (B, S_CLIP, CLIP_DIM), jnp.float32)
    dino_feats = jax.random.normal(k2, (B, S_DINO, DINO_DIM), jnp.float32)
    params = init_params(k3, CLIP_DIM, DINO_DIM)

    out = linear_projection_fusion(clip_feats, dino_feats, params)
    out = jax.block_until_ready(out)

    ref = reference(clip_feats, dino_feats, params)
    assert out.shape == (B, S_CLIP, CLIP_DIM)
    assert jnp.allclose(out, ref, atol=1e-4, rtol=1e-4), "mismatch vs JAX reference"

    print("KERNEL_OK")
</pallas_src>

<mosaic_0001>
module attributes {stable_mosaic.version = 11 : i64} {
  func.func @_fusion_kernel(%arg0: i32, %arg1: i32, %arg2: memref<1x16x128xf32, #tpu.memory_space<vmem>>, %arg3: memref<1x16x256xf32, #tpu.memory_space<vmem>>, %arg4: memref<256x128xf32, #tpu.memory_space<vmem>>, %arg5: memref<8x128xf32, #tpu.memory_space<vmem>>, %arg6: memref<1x16x128xf32, #tpu.memory_space<vmem>>) attributes {dimension_semantics = [#tpu.dimension_semantics<parallel>, #tpu.dimension_semantics<parallel>], iteration_bounds = array<i64: 2, 1>, scalar_prefetch = 0 : i64, scratch_operands = 0 : i64, tpu.core_type = #tpu.core_type<tc>, window_params = [{transform_indices = @transform_0, window_bounds = array<i64: 1, 16, 128>}, {transform_indices = @transform_1, window_bounds = array<i64: 1, 16, 256>}, {pipeline_mode = #tpu.pipeline_mode<synchronous>, transform_indices = @transform_2, window_bounds = array<i64: 256, 128>}, {pipeline_mode = #tpu.pipeline_mode<synchronous>, transform_indices = @transform_3, window_bounds = array<i64: 8, 128>}, {transform_indices = @transform_4, window_bounds = array<i64: 1, 16, 128>}]} {
    %c0 = arith.constant 0 : index
    %c0_0 = arith.constant 0 : index
    %0 = vector.load %arg5[%c0, %c0_0] : memref<8x128xf32, #tpu.memory_space<vmem>>, vector<1x128xf32>
    %c1 = arith.constant 1 : index
    %c0_1 = arith.constant 0 : index
    %1 = vector.load %arg5[%c1, %c0_1] : memref<8x128xf32, #tpu.memory_space<vmem>>, vector<1x128xf32>
    %c2 = arith.constant 2 : index
    %c0_2 = arith.constant 0 : index
    %2 = vector.load %arg5[%c2, %c0_2] : memref<8x128xf32, #tpu.memory_space<vmem>>, vector<1x128xf32>
    %c3 = arith.constant 3 : index
    %c0_3 = arith.constant 0 : index
    %3 = vector.load %arg5[%c3, %c0_3] : memref<8x128xf32, #tpu.memory_space<vmem>>, vector<1x128xf32>
    %c0_4 = arith.constant 0 : index
    %c0_5 = arith.constant 0 : index
    %c0_6 = arith.constant 0 : index
    %4 = vector.load %arg3[%c0_4, %c0_5, %c0_6] : memref<1x16x256xf32, #tpu.memory_space<vmem>>, vector<1x16x256xf32>
    %5 = vector.shape_cast %4 : vector<1x16x256xf32> to vector<16x256xf32>
    %c0_7 = arith.constant 0 : index
    %c0_8 = arith.constant 0 : index
    %6 = vector.load %arg4[%c0_7, %c0_8] : memref<256x128xf32, #tpu.memory_space<vmem>>, vector<256x128xf32>
    %cst = arith.constant dense<0.000000e+00> : vector<16x128xf32>
    %7 = tpu.matmul %5, %6, %cst {dimension_numbers = #tpu.dot_dimension_numbers<[1], [0], [0], [1], [0, 0, 1, 1], [], []>} : vector<16x256xf32>, vector<256x128xf32>, vector<16x128xf32> -> vector<16x128xf32>
    %8 = vector.broadcast %0 : vector<1x128xf32> to vector<16x128xf32>
    %9 = arith.addf %7, %8 : vector<16x128xf32>
    %c0_9 = arith.constant 0 : index
    %c0_10 = arith.constant 0 : index
    %c0_11 = arith.constant 0 : index
    %10 = vector.load %arg2[%c0_9, %c0_10, %c0_11] : memref<1x16x128xf32, #tpu.memory_space<vmem>>, vector<1x16x128xf32>
    %11 = vector.shape_cast %10 : vector<1x16x128xf32> to vector<16x128xf32>
    %cst_12 = arith.constant dense<0.000000e+00> : vector<16xf32>
    %12 = vector.multi_reduction <add>, %11, %cst_12 [1] : vector<16x128xf32> to vector<16xf32>
    %13 = vector.shape_cast %12 : vector<16xf32> to vector<16x1xf32>
    %cst_13 = arith.constant 1.280000e+02 : f32
    %14 = vector.broadcast %cst_13 : f32 to vector<16x1xf32>
    %15 = arith.divf %13, %14 : vector<16x1xf32>
    %16 = vector.broadcast %15 : vector<16x1xf32> to vector<16x128xf32>
    %17 = arith.subf %11, %16 : vector<16x128xf32>
    %18 = arith.mulf %17, %17 : vector<16x128xf32>
    %cst_14 = arith.constant dense<0.000000e+00> : vector<16xf32>
    %19 = vector.multi_reduction <add>, %18, %cst_14 [1] : vector<16x128xf32> to vector<16xf32>
    %20 = vector.shape_cast %19 : vector<16xf32> to vector<16x1xf32>
    %cst_15 = arith.constant 1.280000e+02 : f32
    %21 = vector.broadcast %cst_15 : f32 to vector<16x1xf32>
    %22 = arith.divf %20, %21 : vector<16x1xf32>
    %cst_16 = arith.constant 9.99999974E-6 : f32
    %23 = vector.broadcast %cst_16 : f32 to vector<16x1xf32>
    %24 = arith.addf %22, %23 : vector<16x1xf32>
    %25 = math.rsqrt %24 : vector<16x1xf32>
    %26 = vector.broadcast %25 : vector<16x1xf32> to vector<16x128xf32>
    %27 = arith.mulf %17, %26 : vector<16x128xf32>
    %cst_17 = arith.constant dense<0.000000e+00> : vector<16xf32>
    %28 = vector.multi_reduction <add>, %9, %cst_17 [1] : vector<16x128xf32> to vector<16xf32>
    %29 = vector.shape_cast %28 : vector<16xf32> to vector<16x1xf32>
    %cst_18 = arith.constant 1.280000e+02 : f32
    %30 = vector.broadcast %cst_18 : f32 to vector<16x1xf32>
    %31 = arith.divf %29, %30 : vector<16x1xf32>
    %32 = vector.broadcast %31 : vector<16x1xf32> to vector<16x128xf32>
    %33 = arith.subf %9, %32 : vector<16x128xf32>
    %34 = arith.mulf %33, %33 : vector<16x128xf32>
    %cst_19 = arith.constant dense<0.000000e+00> : vector<16xf32>
    %35 = vector.multi_reduction <add>, %34, %cst_19 [1] : vector<16x128xf32> to vector<16xf32>
    %36 = vector.shape_cast %35 : vector<16xf32> to vector<16x1xf32>
    %cst_20 = arith.constant 1.280000e+02 : f32
    %37 = vector.broadcast %cst_20 : f32 to vector<16x1xf32>
    %38 = arith.divf %36, %37 : vector<16x1xf32>
    %cst_21 = arith.constant 9.99999974E-6 : f32
    %39 = vector.broadcast %cst_21 : f32 to vector<16x1xf32>
    %40 = arith.addf %38, %39 : vector<16x1xf32>
    %41 = math.rsqrt %40 : vector<16x1xf32>
    %42 = vector.broadcast %41 : vector<16x1xf32> to vector<16x128xf32>
    %43 = arith.mulf %33, %42 : vector<16x128xf32>
    %44 = vector.broadcast %1 : vector<1x128xf32> to vector<16x128xf32>
    %45 = arith.mulf %27, %44 : vector<16x128xf32>
    %46 = vector.broadcast %2 : vector<1x128xf32> to vector<16x128xf32>
    %47 = arith.mulf %43, %46 : vector<16x128xf32>
    %48 = arith.addf %45, %47 : vector<16x128xf32>
    %49 = vector.broadcast %3 : vector<1x128xf32> to vector<16x128xf32>
    %50 = arith.addf %48, %49 : vector<16x128xf32>
    %c0_22 = arith.constant 0 : index
    %c0_23 = arith.constant 0 : index
    %c0_24 = arith.constant 0 : index
    %51 = vector.load %arg6[%c0_22, %c0_23, %c0_24] : memref<1x16x128xf32, #tpu.memory_space<vmem>>, vector<1x16x128xf32>
    %52 = vector.shape_cast %51 : vector<1x16x128xf32> to vector<16x128xf32>
    %53 = vector.shape_cast %50 : vector<16x128xf32> to vector<1x16x128xf32>
    tpu.vector_store %arg6[%c0_22, %c0_23, %c0_24], %53 {strides = array<i32>} : memref<1x16x128xf32, #tpu.memory_space<vmem>>, vector<1x16x128xf32>,
    return
  }
  func.func @transform_0(%arg0: i32, %arg1: i32) -> (i32, i32, i32) {
    %c0_i32 = arith.constant 0 : i32
    %c0_i32_0 = arith.constant 0 : i32
    return %arg0, %arg1, %c0_i32 : i32, i32, i32
  }
  func.func @transform_1(%arg0: i32, %arg1: i32) -> (i32, i32, i32) {
    %c0_i32 = arith.constant 0 : i32
    %c0_i32_0 = arith.constant 0 : i32
    return %arg0, %arg1, %c0_i32 : i32, i32, i32
  }
  func.func @transform_2(%arg0: i32, %arg1: i32) -> (i32, i32) {
    %c0_i32 = arith.constant 0 : i32
    %c0_i32_0 = arith.constant 0 : i32
    %c0_i32_1 = arith.constant 0 : i32
    return %c0_i32, %c0_i32_0 : i32, i32
  }
  func.func @transform_3(%arg0: i32, %arg1: i32) -> (i32, i32) {
    %c0_i32 = arith.constant 0 : i32
    %c0_i32_0 = arith.constant 0 : i32
    %c0_i32_1 = arith.constant 0 : i32
    return %c0_i32, %c0_i32_0 : i32, i32
  }
  func.func @transform_4(%arg0: i32, %arg1: i32) -> (i32, i32, i32) {
    %c0_i32 = arith.constant 0 : i32
    %c0_i32_0 = arith.constant 0 : i32
    return %arg0, %arg1, %c0_i32 : i32, i32, i32
  }
}

</mosaic_0001>

<bundles_post_ra>
// kernel: tpu_custom_call.1
= control target key start
LH: loop header
LB: loop body
LE: loop exit
PB: predicated region body
PF: predicated region fallthrough
CT: control target
= control target key end

     0   :  { %s1297_s0 = inlined_call_operand.hbm [shape: f32[2,16,128], index: 0, kind: input, shape index: {}]   ;;  %s1298_s1 = inlined_call_operand.hbm [shape: f32[2,24,256], index: 1, kind: input, shape index: {}]   ;;  %s1299_s2 = inlined_call_operand.hbm [shape: f32[256,128], index: 2, kind: input, shape index: {}]   ;;  %s1300_s3 = inlined_call_operand.hbm [shape: f32[8,128], index: 3, kind: input, shape index: {}]   ;;  %s1301_s4 = inlined_call_operand.hbm [shape: f32[2,16,128], index: 4, kind: output, shape index: {}]  }
   0x1   :  { %1306 = sst [smem:[#allocation19_spill]] %s1297_s0 }
   0x2   :  { %1307 = sst [smem:[#allocation20_spill]] %s1299_s2 }
   0x3   :  { %1308 = sst [smem:[#allocation21_spill]] %s1300_s3 }
   0x4   :  { %9 = vsyncpa [#allocation3], 0 }
   0x5   :  { %11 = vsyncpa [#allocation3 + $0x1], 0 }
   0x6   :  { %12 = vsyncpa [#allocation6], 0 }
   0x7   :  { %14 = vsyncpa [#allocation6 + $0x1], 0 }
   0x8   :  { %15 = vsyncpa [#allocation9], 0 }
   0x9   :  { %16 = vsyncpa [#allocation4], 0 }
   0xa   :  { %18 = vsyncpa [#allocation4 + $0x1], 0  ;;  %s1085_s15 = smov 0   ;;  %s1087_s16 = smov 0  }
   0xb   :  { %s1089_s17 = smov 0   ;;  %s1091_s18 = smov 0  }
   0xc   :  { %s1093_s19 = smov 0   ;;  %s1095_s20 = smov 0  }
   0xd LB: > { %1309 = sst [smem:[#allocation16_spill]] %s1037_s17  ;;  %s1116_s21 = sadd.s32 4294967295, %s1049_s20   ;;  %s1049_s20 = sphi %s1095_s20, %s24_s20   ;;  %s1045_s19 = sphi %s1093_s19, %s1329_s19   ;;  %s1041_s18 = sphi %s1091_s18, %s1328_s18   ;;  %s1037_s17 = sphi %s1089_s17, %s1324_s17   ;;  %s1033_s16 = sphi %s1087_s16, %s1327_s16   ;;  %s1029_s15 = sphi %s1085_s15, %s1326_s15  }
   0xe   : > { %s670_s22 = sadd.s32 4294967294, %s1049_s20   ;;  %p58_p0 = scmp.ne.s32.totalorder %s1033_s16, %s1029_s15 }
   0xf   : > { %p59_p1 = scmp.eq.s32.totalorder %s1116_s21, 0  ;;  %p154_p2 = scmp.eq.s32.totalorder %s1116_s21, 1 }
  0x10   : > { %p160_p3 = scmp.eq.s32.totalorder %s670_s22, 1  ;;  %p671_p5 = scmp.ge.s32.totalorder %s1049_s20, 1 }
  0x11   : > { %p1125_p4 = por %p59_p1, %p58_p0  ;;  %p167_p7 = scmp.lt.s32.totalorder %s1049_s20, 3 }
  0x12   : > { %p1130_p6 = por %p160_p3, %p58_p0  ;;  %s1312_s2 = sld [smem:[#allocation20_spill]] }
  0x13   : > { %p1138_p8 = pnand %p671_p5, %p167_p7  ;;  %s1051_s29 = smov [#allocation7]  }
  0x14   : > { %s180_s30 = sshll.u32 %s1051_s29, 4  ;;  %p674_p11 = scmp.ge.s32.totalorder %s1049_s20, 2  ;;  %s181_s30 = int_to_ptr.vmem [resolvable:$true] %s180_s30 }
  0x15   : > { %p740_p9 = pneg %p1138_p8  ;;  %s1314_s3 = sld [smem:[#allocation21_spill]] }
  0x16   : > { %s1302_s8 = smov 128   ;;  %s1303_s9 = smov 8  }
  0x17   : > { %p741_p10 = pnand %p740_p9, %p59_p1  ;;  %s1054_s10 = smov [#allocation8]  }
  0x18   : > { %s178_s27 = sshll.u32 %s1312_s2, 4  ;;  %s195_s11 = sshll.u32 %s1054_s10, 4  ;;  %s179_s27 = int_to_ptr.hbm [resolvable:$true] %s178_s27  ;;  %s196_s11 = int_to_ptr.vmem [resolvable:$true] %s195_s11 }
  0x19   : > { %743 = dma.hbm_to_vmem [thread:$0]  (!%p741_p10), %s179_s27, 4096, %s181_s30, [#allocation6], %s1302_s8, %s1302_s8, %s1303_s9  }
  0x1a   : > { %s36_s12 = sadd.s32 1, %s1045_s19  ;;  %s45_s13 = sadd.s32 1, %s1037_s17 }
  0x1b   : > { %s193_s7 = sshll.u32 %s1314_s3, 4  ;;  %p38_p12 = scmp.ge.s32.totalorder %s36_s12, 2  ;;  %s194_s7 = int_to_ptr.hbm [resolvable:$true] %s193_s7 }
  0x1c   : > { %746 = dma.hbm_to_vmem [thread:$0]  (!%p741_p10), %s194_s7, 128, %s196_s11, [#allocation9]  }
  0x1d   : > { %p52_p13 = scmp.ne.s32.totalorder %s1037_s17, %s1033_s16  ;;  %p53_p0 = scmp.eq.s32.totalorder %s1049_s20, 0 }
  0x1e   : > { %p760_p3 = scmp.lt.s32.totalorder %s1049_s20, 2  ;;  %s1331_s12 = smov (%p38_p12, %s36_s12), 0 }
  0x1f   : > { %1315 = sst [smem:[#allocation17_spill]] %s1331_s12  ;;  %p1161_p5 = por %p53_p0, %p52_p13 }
  0x20   : > { %p1167_p7 = por %p154_p2, %p52_p13  ;;  %s40_s25 = ssub.s32 %s1045_s19, %s1331_s12 }
  0x21   : > { %s206_s26 = sand.u32 1, %s1037_s17   ;;  %p43_p9 = scmp.eq.s32.totalorder %s40_s25, 0 }
  0x22   : > { %s675_s27 = sshll.u32 %s206_s26, 4  ;;  %s691_s29 = sshll.u32 %s1045_s19, 4 }
  0x23   : > { %s1176_s30 = scalar_select %p43_p9, %s1037_s17, %s45_s13  }
  0x24   : > { %s1319_s0 = sld [smem:[#allocation19_spill]]  ;;  %s210_s11 = scalar_lea.vmem [#allocation2], %s675_s27 }
  0x25   : > { %1318 = sst [smem:[#allocation18_spill]] %s1176_s30  ;;  %s220_s8 = sshll.u32 %s210_s11, 4  ;;  %s221_s8 = int_to_ptr.vmem [resolvable:$true] %s220_s8 }
  0x26   : > { %p1185_p2 = pnand %p760_p3, %p1161_p5  ;;  %s230_s25 = sand.u32 1, %s1049_s20  }
  0x27   : > { %s678_s13 = sshll.u32 %s206_s26, 5  ;;  %s207_s2 = scalar_lea.sflag [#allocation3], %s206_s26 }
  0x28   : > { %s1321_s3 = smov 8   ;;  %s1322_s5 = smov 128  }
  0x29   : > { %s725_s27 = smul.u32 48, %s1045_s19  ;;  %s231_s12 = scalar_lea.sflag [#allocation6], %s230_s25 }
  0x2a   : > { %s217_s7 = scalar_lea.hbm %s1319_s0, %s691_s29  ;;  %s234_s29 = scalar_lea.vmem [#allocation5], %s678_s13 }
  0x2b   : > { %s218_s10 = sshll.u32 %s217_s7, 4  ;;  %s253_s6 = sshll.u32 %s234_s29, 4  ;;  %s219_s10 = int_to_ptr.hbm [resolvable:$true] %s218_s10  ;;  %s254_s6 = int_to_ptr.vmem [resolvable:$true] %s253_s6 }
  0x2c   : > { %750 = dma.hbm_to_vmem [thread:$0]  (!%p1185_p2), %s219_s10, 256, %s221_s8, %s207_s2, %s1322_s5, %s1322_s5, %s1321_s3  }
  0x2d   : > { %s249_s11 = scalar_lea.hbm %s1298_s1, %s725_s27  ;;  %s1055_s30 = smov 256  }
  0x2e   : > { %s251_s0 = sshll.u32 %s249_s11, 4  ;;  %s1056_s17 = smov 16   ;;  %s252_s0 = int_to_ptr.hbm [resolvable:$true] %s251_s0 }
  0x2f   : > { %753 = dma.hbm_to_vmem [thread:$0]  (!%p1185_p2), %s252_s0, 512, %s254_s6, %s231_s12, %s1055_s30, %s1055_s30, %s1056_s17  }
  0x30   : > { %265 = sbr.rel (%p1138_p8) target bundleno = 503 (0x1f7), region = 36  ;;  %s1204_s2 = sand.u32 (!%p1138_p8), 1, %s1033_s16  }
  0x31   : > { %s681_s3 = sshll.u32 (!%p1138_p8), %s1204_s2, 4  ;;  %s268_s8 = scalar_lea.sflag (!%p1138_p8), [#allocation3], %s1204_s2 }
  0x32   : > { %s1210_s26 = scalar_lea.vmem (!%p1138_p8), [#allocation2], %s681_s3 }
  0x35   : > { %1008 = dma.done.wait (%p1125_p4), %s268_s8, 256  }
  0x36   : > { %1010 = vsyncadd (%p1125_p4), %s268_s8, 4294967040  ;;  %s277_s0 = sand.u32 1, %s1116_s21   ;;  %s682_s17 = sshll.u32 %s1204_s2, 5 }
  0x37   : > { %s278_s28 = scalar_lea.sflag [#allocation6], %s277_s0  ;;  %s1218_s9 = scalar_lea.vmem [#allocation5], %s682_s17 }
  0x38   : > { %1012 = dma.done.wait (%p1125_p4), %s278_s28, 512  }
  0x39   : > { %1014 = vsyncadd (%p1125_p4), %s278_s28, 4294966784 }
  0x3a   : > { %1016 = dma.done.wait (%p59_p1), [#allocation6], 4096  }
  0x3b   : > { %1018 = vsyncadd (%p59_p1), [#allocation6], 4294963200 }
  0x3c   : > { %1020 = dma.done.wait (%p59_p1), [#allocation9], 128  }
  0x3d   : > { %1022 = vsyncadd (%p59_p1), [#allocation9], 4294967168  ;;  %v353_v0 = vld [vmem:[#allocation7 + $0x78] sm:$0xff]  ;;  %v352_v1 = vld [vmem:[#allocation7 + $0x70] sm:$0xff]  ;;  %v1057_v38 = vmov 128.0   ;;  %s692_s21 = sshll.u32 %s1041_s18, 4 }
  0x3e   : > { %v369_v2 = vld [vmem:[#allocation7 + $0xf8] sm:$0xff]  ;;  %371 = vmatpush.msra.mxu0 %v353_v0  ;;  %693 = vmatpush.msra.mxu2 %v353_v0  ;;  %v368_v3 = vld [vmem:[#allocation7 + $0xf0] sm:$0xff]  ;;  %v351_v4 = vld [vmem:[#allocation7 + $0x68] sm:$0xff]  ;;  %825 = vrcp.f32 %v1057_v38  ;;  %s533_s30 = scalar_lea.hbm %s1301_s4, %s692_s21  ;;  %s321_s10 = scalar_lea.vmem [#allocation10], %s681_s3 }
  0x3f   : > { %394 = vmatpush.msra.mxu1 %v369_v2  ;;  %709 = vmatpush.msra.mxu3 %v369_v2  ;;  %v367_v5 = vld [vmem:[#allocation7 + $0xe8] sm:$0xff]  ;;  %v350_v6 = vld [vmem:[#allocation7 + $0x60] sm:$0xff]  ;;  %v349_v8 = vld [vmem:[#allocation7 + $0x58] sm:$0xff]  ;;  %s534_s18 = sshll.u32 %s321_s10, 4  ;;  %s536_s25 = sshll.u32 %s533_s30, 4  ;;  %s535_s18 = int_to_ptr.vmem [resolvable:$true] %s534_s18  ;;  %s537_s25 = int_to_ptr.hbm [resolvable:$true] %s536_s25 }
  0x40   : > { %372 = vmatpush.msra.mxu0 %v352_v1  ;;  %694 = vmatpush.msra.mxu2 %v352_v1  ;;  %v366_v7 = vld [vmem:[#allocation7 + $0xe0] sm:$0xff]  ;;  %v365_v9 = vld [vmem:[#allocation7 + $0xd8] sm:$0xff]  ;;  %v348_v10 = vld [vmem:[#allocation7 + $0x50] sm:$0xff]  ;;  %s520_s13 = scalar_lea.sflag [#allocation4], %s1204_s2  ;;  %s969_s5 = sshra.s32 %s537_s25, 4  ;;  %s970_s5 = int_to_ptr.hbm [resolvable:$true] %s969_s5 }
  0x41   : > { %395 = vmatpush.msra.mxu1 %v368_v3  ;;  %710 = vmatpush.msra.mxu3 %v368_v3  ;;  %v364_v11 = vld [vmem:[#allocation7 + $0xd0] sm:$0xff]  ;;  %v347_v12 = vld [vmem:[#allocation7 + $0x48] sm:$0xff]  ;;  %v346_v14 = vld [vmem:[#allocation7 + $0x40] sm:$0xff]  ;;  %s971_s27 = scalar_lea.hbm %s970_s5, 16  ;;  %s975_s14 = scalar_lea.hbm %s1301_s4, 32 }
  0x42   : > { %373 = vmatpush.msra.mxu0 %v351_v4  ;;  %695 = vmatpush.msra.mxu2 %v351_v4  ;;  %v363_v13 = vld [vmem:[#allocation7 + $0xc8] sm:$0xff]  ;;  %v362_v15 = vld [vmem:[#allocation7 + $0xc0] sm:$0xff]  ;;  %v345_v16 = vld [vmem:[#allocation7 + $0x38] sm:$0xff]  ;;  %p972_p1 = scmp.ne.s32.totalorder %s970_s5, %s971_s27  ;;  %p976_p10 = scmp.lt.s32.totalorder %s970_s5, %s1301_s4 }
  0x43   : > { %396 = vmatpush.msra.mxu1 %v367_v5  ;;  %711 = vmatpush.msra.mxu3 %v367_v5  ;;  %v361_v17 = vld [vmem:[#allocation7 + $0xb8] sm:$0xff]  ;;  %v344_v18 = vld [vmem:[#allocation7 + $0x30] sm:$0xff]  ;;  %v343_v21 = vld [vmem:[#allocation7 + $0x28] sm:$0xff]  ;;  %p977_p12 = scmp.lt.s32.totalorder %s975_s14, %s971_s27 }
  0x44   : > { %374 = vmatpush.msra.mxu0 %v350_v6  ;;  %696 = vmatpush.msra.mxu2 %v350_v6  ;;  %v360_v19 = vld [vmem:[#allocation7 + $0xb0] sm:$0xff]  ;;  %v359_v22 = vld [vmem:[#allocation7 + $0xa8] sm:$0xff]  ;;  %v342_v23 = vld [vmem:[#allocation7 + $0x20] sm:$0xff]  ;;  %v826_v39 = vpop.eup %825  ;;  %p973_p4 = pnand %p972_p1, %p1167_p7 }
  0x45   : > { %397 = vmatpush.msra.mxu1 %v366_v7  ;;  %712 = vmatpush.msra.mxu3 %v366_v7  ;;  %v1233_v20 = vld [vmem:[%s1210_s26] sm:$0xff]  ;;  %v341_v25 = vld [vmem:[#allocation7 + $0x18] sm:$0xff]  ;;  %v339_v29 = vld [vmem:[#allocation7 + $0x8] sm:$0xff]  ;;  %v424_v40 = vmul.f32 128.0, %v826_v39  ;;  %vm428_vm0 = vweird.f32 %v826_v39  ;;  %p978_p13 = por %p977_p12, %p976_p10 }
  0x46   : > { %375 = vmatpush.msra.mxu0 %v349_v8  ;;  %697 = vmatpush.msra.mxu2 %v349_v8  ;;  %v358_v24 = vld [vmem:[#allocation7 + $0xa0] sm:$0xff]  ;;  %v357_v26 = vld [vmem:[#allocation7 + $0x98] sm:$0xff]  ;;  %v340_v27 = vld [vmem:[#allocation7 + $0x10] sm:$0xff]  ;;  %p974_p8 = pneg %p973_p4 }
  0x47   : > { %398 = vmatpush.msra.mxu1 %v365_v9  ;;  %713 = vmatpush.msra.mxu3 %v365_v9  ;;  %v356_v28 = vld [vmem:[#allocation7 + $0x90] sm:$0xff]  ;;  %v418_v30 = vld [vmem:[%s1210_s26 + $0x8] sm:$0xff]  ;;  %v338_v31 = vld [vmem:[#allocation7] sm:$0xff]  ;;  %v425_v41 = vsub.f32 1.0, %v424_v40 }
  0x48   : > { %376 = vmatpush.msra.mxu0 %v348_v10  ;;  %698 = vmatpush.msra.mxu2 %v348_v10  ;;  %v355_v32 = vld [vmem:[#allocation7 + $0x88] sm:$0xff]  ;;  %v334_v33 = vld [vmem:[%s1218_s9] sm:$0xff]  ;;  %v336_v35 = vld [vmem:[%s1218_s9 + $0x10] sm:$0xff]  ;;  %p979_p0 = pnand %p978_p13, %p974_p8 }
  0x49   : > { %399 = vmatpush.msra.mxu1 %v364_v11  ;;  %714 = vmatpush.msra.mxu3 %v364_v11  ;;  %v354_v34 = vld [vmem:[#allocation7 + $0x80] sm:$0xff]  ;;  %v335_v36 = vld [vmem:[%s1218_s9 + $0x8] sm:$0xff]  ;;  %v337_v37 = vld [vmem:[%s1218_s9 + $0x18] sm:$0xff]  ;;  %v426_v42 = vmul.f32 %v826_v39, %v425_v41 }
  0x4a   : > { %377 = vmatpush.msra.mxu0 %v347_v12  ;;  %699 = vmatpush.msra.mxu2 %v347_v12  ;;  %v821_v53 = vld [vmem:[#allocation8] ss:$0 sm:$0xff]  ;;  %v823_v40 = vld [vmem:[#allocation8 + $0x2] ss:$0 sm:$0xff] }
  0x4b   : > { %400 = vmatpush.msra.mxu1 %v363_v13  ;;  %715 = vmatpush.msra.mxu3 %v363_v13  ;;  %v427_v43 = vadd.f32 %v826_v39, %v426_v42 }
  0x4c   : > { %378 = vmatpush.msra.mxu0 %v346_v14  ;;  %700 = vmatpush.msra.mxu2 %v346_v14 }
  0x4d   : > { %401 = vmatpush.msra.mxu1 %v362_v15  ;;  %716 = vmatpush.msra.mxu3 %v362_v15  ;;  %v429_v44 = vsel %vm428_vm0, %v826_v39, %v427_v43  ;;  %v822_v39 = vld [vmem:[#allocation8 + $0x1] ss:$0 sm:$0xff] }
  0x4e   : > { %379 = vmatpush.msra.mxu0 %v345_v16  ;;  %701 = vmatpush.msra.mxu2 %v345_v16 }
  0x4f   : > { %402 = vmatpush.msra.mxu1 %v361_v17  ;;  %717 = vmatpush.msra.mxu3 %v361_v17 }
  0x50   : > { %380 = vmatpush.msra.mxu0 %v344_v18  ;;  %702 = vmatpush.msra.mxu2 %v344_v18 }
  0x51   : > { %403 = vmatpush.msra.mxu1 %v360_v19  ;;  %419 = vadd.xlane.f32.xlu0 %v1233_v20 }
  0x52   : > { %381 = vmatpush.msra.mxu0 %v343_v21  ;;  %703 = vmatpush.msra.mxu2 %v343_v21 }
  0x53   : > { %718 = vmatpush.msra.mxu3 %v360_v19  ;;  %404 = vmatpush.msra.mxu1 %v359_v22 }
  0x54   : > { %382 = vmatpush.msra.mxu0 %v342_v23  ;;  %704 = vmatpush.msra.mxu2 %v342_v23 }
  0x55   : > { %719 = vmatpush.msra.mxu3 %v359_v22  ;;  %405 = vmatpush.msra.mxu1 %v358_v24 }
  0x56   : > { %383 = vmatpush.msra.mxu0 %v341_v25  ;;  %705 = vmatpush.msra.mxu2 %v341_v25 }
  0x57   : > { %720 = vmatpush.msra.mxu3 %v358_v24  ;;  %406 = vmatpush.msra.mxu1 %v357_v26 }
  0x58   : > { %384 = vmatpush.msra.mxu0 %v340_v27  ;;  %706 = vmatpush.msra.mxu2 %v340_v27 }
  0x59   : > { %721 = vmatpush.msra.mxu3 %v357_v26  ;;  %407 = vmatpush.msra.mxu1 %v356_v28 }
  0x5a   : > { %385 = vmatpush.msra.mxu0 %v339_v29  ;;  %421 = vadd.xlane.f32.xlu0 %v418_v30 }
  0x5b   : > { %707 = vmatpush.msra.mxu2 %v339_v29  ;;  %722 = vmatpush.msra.mxu3 %v356_v28 }
  0x5c   : > { %386 = vmatpush.msra.mxu0 %v338_v31  ;;  %408 = vmatpush.msra.mxu1 %v355_v32 }
  0x5d   : > { %387 = vmatmul.f32.vlgmr.msra.gmra.mxu0 %v334_v33  ;;  %708 = vmatpush.msra.mxu2 %v338_v31 }
  0x5e   : > { %723 = vmatpush.msra.mxu3 %v355_v32  ;;  %409 = vmatpush.msra.mxu1 %v354_v34 }
  0x5f   : > { %390 = vmatmul.f32.vlgmr.msra.gmra.mxu2 %v336_v35  ;;  %410 = vmatmul.f32.vlgmr.msra.gmra.mxu1 %v335_v36 }
  0x60   : > { %724 = vmatpush.msra.mxu3 %v354_v34 }
  0x61   : > { %413 = vmatmul.f32.vlgmr.msra.gmra.mxu3 %v337_v37 }
  0xc4   : > { %v420_v45 = vpop.xlane.xlu0 %419 }
  0xc5   : > { %v430_v46 = vmul.f32 %v429_v44, %v420_v45 }
  0xc7   : > { %v1242_v47 = vsub.f32 %v1233_v20, %v430_v46 }
  0xc9   : > { %v434_v48 = vmul.f32 %v1242_v47, %v1242_v47 }
  0xcb   : > { %436 = vadd.xlane.f32.xlu2 %v434_v48  ;;  %v824_v48 = vld [vmem:[#allocation8 + $0x3] ss:$0 sm:$0xff] }
  0xcd   : > { %v422_v49 = vpop.xlane.xlu0 %421 }
  0xce   : > { %v431_v50 = vmul.f32 %v429_v44, %v422_v49 }
  0xd0   : > { %v1246_v51 = vsub.f32 %v418_v30, %v431_v50 }
  0xd2   : > { %v435_v52 = vmul.f32 %v1246_v51, %v1246_v51 }
  0xd4   : > { %438 = vadd.xlane.f32.xlu2 %v435_v52 }
  0xda   : > { %v388_v54 = vpop.f32.mrf.mxu0 }
  0xdb   : > { %v389_v55 = vadd.f32 %v821_v53, %v388_v54 }
  0xdc   : > { %v411_v56 = vpop.f32.mrf.mxu1 }
  0xdd   : > { %v412_v57 = vadd.f32 %v411_v56, %v389_v55 }
  0xdf   : > { %466 = vadd.xlane.f32.xlu1 %v412_v57 }
  0xe2   : > { %v391_v58 = vpop.f32.mrf.mxu2 }
  0xe3   : > { %v392_v59 = vadd.f32 %v821_v53, %v391_v58 }
  0xe4   : > { %v414_v60 = vpop.f32.mrf.mxu3 }
  0xe5   : > { %v415_v61 = vadd.f32 %v414_v60, %v392_v59 }
  0xe7   : > { %468 = vadd.xlane.f32.xlu1 %v415_v61 }
 0x13e   : > { %v437_v6 = vpop.xlane.xlu2 %436 }
 0x13f   : > { %v440_v7 = vmul.f32 %v437_v6, %v429_v44 }
 0x141   : > { %v442_v8 = vadd.f32 1e-05, %v440_v7 }
 0x143   : > { %827 = vrsqrt.f32 %v442_v8  ;;  %vm450_vm1 = vweird.f32 %v442_v8 }
 0x147   : > { %v439_v9 = vpop.xlane.xlu2 %438 }
 0x148   : > { %v441_v10 = vmul.f32 %v439_v9, %v429_v44 }
 0x149   : > { %v828_v12 = vpop.eup %827 }
 0x14a   : > { %v443_v11 = vadd.f32 1e-05, %v441_v10  ;;  %v445_v13 = vmul.f32 %v828_v12, %v442_v8  ;;  %vm451_vm2 = vweird.f32 %v828_v12 }
 0x14b   : > { %vm452_vm3 = vmor %vm450_vm1, %vm451_vm2 }
 0x14c   : > { %829 = vrsqrt.f32 %v443_v11  ;;  %v446_v16 = vmul.f32 %v828_v12, %v445_v13  ;;  %vm460_vm5 = vweird.f32 %v443_v11 }
 0x14e   : > { %v447_v19 = vmul.f32 0.5, %v446_v16 }
 0x150   : > { %v448_v23 = vsub.f32 1.5, %v447_v19 }
 0x152   : > { %v467_v62 = vpop.xlane.xlu1 %466  ;;  %v830_v17 = vpop.eup %829  ;;  %v449_v28 = vmul.f32 %v828_v12, %v448_v23 }
 0x153   : > { %v470_v63 = vmul.f32 %v467_v62, %v429_v44  ;;  %v455_v20 = vmul.f32 %v830_v17, %v443_v11  ;;  %vm461_vm6 = vweird.f32 %v830_v17 }
 0x154   : > { %v453_v32 = vsel %vm452_vm3, %v828_v12, %v449_v28  ;;  %vm462_vm9 = vmor %vm460_vm5, %vm461_vm6 }
 0x155   : > { %v472_v0 = vsub.f32 %v412_v57, %v470_v63  ;;  %v456_v24 = vmul.f32 %v830_v17, %v455_v20  ;;  %v464_v38 = vmul.f32 %v453_v32, %v1242_v47 }
 0x157   : > { %v474_v1 = vmul.f32 %v472_v0, %v472_v0  ;;  %v457_v29 = vmul.f32 0.5, %v456_v24  ;;  %v507_v46 = vmul.f32 %v822_v39, %v464_v38 }
 0x159   : > { %476 = vadd.xlane.f32.xlu0 %v474_v1  ;;  %v458_v33 = vsub.f32 1.5, %v457_v29 }
 0x15a   : > { %v469_v2 = vpop.xlane.xlu1 %468 }
 0x15b   : > { %v471_v3 = vmul.f32 %v469_v2, %v429_v44  ;;  %v459_v41 = vmul.f32 %v830_v17, %v458_v33 }
 0x15d   : > { %v1250_v4 = vsub.f32 %v415_v61, %v471_v3  ;;  %v463_v50 = vsel %vm462_vm9, %v830_v17, %v459_v41 }
 0x15e   : > { %v465_v54 = vmul.f32 %v463_v50, %v1246_v51 }
 0x15f   : > { %v475_v5 = vmul.f32 %v1250_v4, %v1250_v4 }
 0x160   : > { %v508_v58 = vmul.f32 %v822_v39, %v465_v54 }
 0x161   : > { %478 = vadd.xlane.f32.xlu1 %v475_v5 }
 0x1cc   : > { %v477_v14 = vpop.xlane.xlu0 %476 }
 0x1cd   : > { %v480_v15 = vmul.f32 %v477_v14, %v429_v44 }
 0x1cf   : > { %v482_v18 = vadd.f32 1e-05, %v480_v15 }
 0x1d1   : > { %831 = vrsqrt.f32 %v482_v18  ;;  %vm490_vm7 = vweird.f32 %v482_v18 }
 0x1d4   : > { %v479_v21 = vpop.xlane.xlu1 %478 }
 0x1d5   : > { %v481_v22 = vmul.f32 %v479_v21, %v429_v44 }
 0x1d7   : > { %v832_v25 = vpop.eup %831  ;;  %v483_v26 = vadd.f32 1e-05, %v481_v22 }
 0x1d8   : > { %v485_v27 = vmul.f32 %v832_v25, %v482_v18  ;;  %vm491_vm4 = vweird.f32 %v832_v25 }
 0x1d9   : > { %833 = vrsqrt.f32 %v483_v26  ;;  %vm492_vm8 = vmor %vm490_vm7, %vm491_vm4  ;;  %vm500_vm11 = vweird.f32 %v483_v26 }
 0x1da   : > { %v486_v30 = vmul.f32 %v832_v25, %v485_v27 }
 0x1dc   : > { %v487_v31 = vmul.f32 0.5, %v486_v30 }
 0x1de   : > { %v488_v34 = vsub.f32 1.5, %v487_v31 }
 0x1df   : > { %v834_v35 = vpop.eup %833 }
 0x1e0   : > { %v489_v36 = vmul.f32 %v832_v25, %v488_v34  ;;  %v495_v37 = vmul.f32 %v834_v35, %v483_v26  ;;  %vm501_vm10 = vweird.f32 %v834_v35 }
 0x1e1   : > { %vm502_vm12 = vmor %vm500_vm11, %vm501_vm10 }
 0x1e2   : > { %v493_v42 = vsel %vm492_vm8, %v832_v25, %v489_v36  ;;  %v496_v43 = vmul.f32 %v834_v35, %v495_v37 }
 0x1e3   : > { %v504_v44 = vmul.f32 %v493_v42, %v472_v0 }
 0x1e4   : > { %v497_v45 = vmul.f32 0.5, %v496_v43 }
 0x1e5   : > { %v510_v49 = vmul.f32 %v823_v40, %v504_v44 }
 0x1e6   : > { %v498_v52 = vsub.f32 1.5, %v497_v45 }
 0x1e7   : > { %v512_v53 = vadd.f32 %v510_v49, %v507_v46 }
 0x1e8   : > { %v499_v47 = vmul.f32 %v834_v35, %v498_v52 }
 0x1e9   : > { %v515_v55 = vadd.f32 %v824_v48, %v512_v53 }
 0x1ea   : > { %v503_v56 = vsel %vm502_vm12, %v834_v35, %v499_v47 }
 0x1eb   : > { %v505_v57 = vmul.f32 %v503_v56, %v1250_v4  ;;  %517 = vst [vmem:[%s321_s10] sm:$0xff] %v515_v55 }
 0x1ed   : > { %v511_v59 = vmul.f32 %v823_v40, %v505_v57 }
 0x1ef   : > { %v513_v60 = vadd.f32 %v511_v59, %v508_v58 }
 0x1f1   : > { %v516_v51 = vadd.f32 %v824_v48, %v513_v60 }
 0x1f3   : > { %518 = vst [vmem:[%s321_s10 + $0x8] sm:$0xff] %v516_v51 }
 0x1f4   : > { %982 = shalt.err (!%p979_p0)
}
 0x1f5   : > { %s1058_s2 = smov 128   ;;  %s1059_s3 = smov 8  }
 0x1f6   : > { %738 = dma.vmem_to_hbm [thread:$0]  (%p1167_p7), %s535_s18, 256, %s537_s25, %s520_s13, %s1058_s2, %s1058_s2, %s1059_s3  }
 0x1f7 PF: > { %s551_s8 = sand.u32 1, %s1029_s15   ;;  %p755_p3 = pnand %p674_p11, %p1130_p6 }
 0x1f8   : > { %s552_s26 = scalar_lea.sflag [#allocation4], %s551_s8 }
 0x1f9   : > { %p756_p5 = pneg %p755_p3 }
 0x1fb   : > { %1024 = dma.done.wait (%p756_p5), %s552_s26, 256  }
 0x1fc   : > { %1026 = vsyncadd (%p756_p5), %s552_s26, 4294967040  ;;  %s24_s20 = sadd.s32 1, %s1049_s20   ;;  %s1323_s0 = sld [smem:[#allocation16_spill]] }
 0x1fd   : > { %p21_p9 = scmp.ge.s32.totalorder %s24_s20, 4   ;;  %s1324_s17 = sld [smem:[#allocation18_spill]] }
 0x1fe   : > { %s1325_s22 = sld [smem:[#allocation17_spill]]  ;;  %s1326_s15 = smov %s1033_s16 }
 0x1ff   : > { %s1328_s18 = smov %s1045_s19 }
 0x200   :  { %23 = sbr.rel (!%p21_p9) target bundleno = 13 (0xd), region = 102 }
 0x202   : > { %s1327_s16 = smov %s1323_s0 }
 0x204   : > { %s1329_s19 = smov %s1325_s22 }
 0x205   :  { %558 = vsyncpa [#allocation3], 1 }
 0x206   :  { %560 = vsyncpa [#allocation3 + $0x1], 1 }
 0x207   :  { %561 = vsyncpa [#allocation6], 1 }
 0x208   :  { %563 = vsyncpa [#allocation6 + $0x1], 1 }
 0x209   :  { %564 = vsyncpa [#allocation9], 1 }
 0x20a   :  { %565 = vsyncpa [#allocation4], 1 }
 0x20b   :  { %567 = vsyncpa [#allocation4 + $0x1], 1 }

</bundles_post_ra>
